<compile_context>
chip_gen: v7x
topology: tpu7x:2x2x1
jax: 0.10.0
libtpu: 0.0.40
codegen_flags: <defaults>
</compile_context>

<pallas_src>
import functools

import jax
import jax.numpy as jnp
import numpy as np
from jax.experimental import pallas as pl
from jax.experimental.pallas import tpu as pltpu


def get_quantize_range(bit_width):
    """[-2**(bit_width-1), 2**(bit_width-1) - 1]; e.g. bit_width=8 -> (-128, 127)."""
    q_max = (1 << (bit_width - 1)) - 1
    q_min = -(1 << (bit_width - 1))
    return (q_min, q_max)


def _use_int8_mxu():
    """v5e / v6e have a native int8 MXU path (exact int32 accumulation).

    v7x (and unknown chips) have no integer MXU path -> bf16 operands
    (bf16 exactly represents int8 values), f32 per-step accumulation.
    """
    try:
        kind = jax.devices()[0].device_kind.lower()
    except Exception:  # pragma: no cover - defensive
        kind = ""
    return ("v5" in kind) or ("v6" in kind)


def _round_up(x, m):
    return ((x + m - 1) // m) * m


def _pick_tile(dim, cap, align):
    """Return (tile, padded_dim): aligned tile <= cap with padded_dim % tile == 0."""
    if dim <= cap:
        t = _round_up(dim, align)           # whole dim in one aligned block
        return t, t
    t = (cap // align) * align              # prefer an aligned divisor (no padding)
    while t >= align:
        if dim % t == 0:
            return t, dim
        t -= align
    t = (cap // align) * align              # no divisor: pad to a multiple of cap
    return t, _round_up(dim, t)


def _qlinear_kernel(x_ref, wt_ref, b_ref, s_ref, o_ref, acc_ref, *,
                    cast_x_dtype, output_zero_point, q_min, q_max):
    k = pl.program_id(2)

    @pl.when(k == 0)
    def _init():
        acc_ref[...] = jnp.zeros_like(acc_ref)

    x = x_ref[...]       # (tm, tk) int8
    w = wt_ref[...]      # (tk, tn) int8 (v5e/v6e) or bf16 (v7x, pre-cast host-side)
    if cast_x_dtype is not None:
        # bf16 MXU path: only x is cast in-kernel; the per-step f32 dot is exact
        # for tk <= 1024 (|partial sum| <= 2^24), then accumulated exactly in int32.
        step = jax.lax.dot_general(
            x.astype(cast_x_dtype), w,
            dimension_numbers=(((1,), (0,)), ((), ())),
            preferred_element_type=jnp.float32)
        acc_ref[...] += step.astype(jnp.int32)
    else:
        # native int8 MXU path: int32 accumulation, exact for any K.
        acc_ref[...] += jax.lax.dot_general(
            x, w,
            dimension_numbers=(((1,), (0,)), ((), ())),
            preferred_element_type=jnp.int32)

    @pl.when(k == pl.num_programs(2) - 1)
    def _finalize():
        acc = (acc_ref[...] + b_ref[...]).astype(jnp.float32)   # exact int32 bias add
        # folded per-channel requant scale: S_x * S_w[n] / S_y (precomputed)
        y = acc * s_ref[...] + jnp.float32(output_zero_point)
        y = jnp.clip(jnp.round(y), q_min, q_max)                # round-half-even, clamp
        o_ref[...] = y.astype(jnp.int8)


def quantized_linear(x, weight_t, shifted_q_bias, combined_scale, *,
                     output_zero_point, feature_bit_width=8):
    """Pallas implementation of QuantizedLinear.forward.

    x:               [B, K] int8
    weight_t:        [K, N] int8 (or bf16 on chips without an int8 MXU path)
    shifted_q_bias:  [N]    int32
    combined_scale:  [N]    float32  (= input_scale * weight_scale / output_scale)
    """
    assert x.dtype == jnp.int8
    assert shifted_q_bias.dtype == jnp.int32
    B, K = x.shape
    K2, N = weight_t.shape
    assert K == K2
    q_min, q_max = get_quantize_range(feature_bit_width)

    int8_mxu = _use_int8_mxu() and weight_t.dtype == jnp.int8
    cast_x_dtype = None if int8_mxu else jnp.bfloat16
    if not int8_mxu and weight_t.dtype != jnp.bfloat16:
        weight_t = weight_t.astype(jnp.bfloat16)   # one-time when called via the class

    # Tile sizing:
    #  * tm cap 512 (32-aligned: int8 native (32,128) tiling) and tn cap 1024
    #    keep the kernel above v6e's ~330 int8 MAC / HBM-byte crossover.
    #  * tk cap 2048 on the int8 path (fewer, fatter k-steps -> less acc RMW and
    #    step overhead on v5e); 1024 on the bf16 path for exactness.
    tk_cap = 2048 if int8_mxu else 1024
    tm, Bp = _pick_tile(B, 512, 32)
    tn, Np = _pick_tile(N, 1024, 128)
    tk, Kp = _pick_tile(K, tk_cap, 128)

    # v7x has 2 TensorCores: guarantee >=2 blocks along a "parallel" grid axis
    # so dimension_semantics can shard work across both cores.
    if not _use_int8_mxu() and (Bp // tm) * (Np // tn) == 1:
        if tn == Np and Np % 256 == 0:
            tn = Np // 2
        elif tm == Bp and Bp % 64 == 0:
            tm = Bp // 2

    # Host-side zero padding instead of a whole-dimension fallback block.
    if (Bp, Kp) != (B, K):
        x = jnp.pad(x, ((0, Bp - B), (0, Kp - K)))
    if (Kp, Np) != (K, N):
        # TODO(synk): for awkward K/N this pads the weight on every call; pre-pad
        # once at module construction if this path is hot.
        weight_t = jnp.pad(weight_t, ((0, Kp - K), (0, Np - N)))
    bias2d = shifted_q_bias.reshape(1, N)
    scale2d = combined_scale.reshape(1, N).astype(jnp.float32)
    if Np != N:
        bias2d = jnp.pad(bias2d, ((0, 0), (0, Np - N)))
        scale2d = jnp.pad(scale2d, ((0, 0), (0, Np - N)))

    grid = (Bp // tm, Np // tn, Kp // tk)

    kernel = functools.partial(
        _qlinear_kernel,
        cast_x_dtype=cast_x_dtype,
        output_zero_point=int(output_zero_point),
        q_min=q_min, q_max=q_max,
    )

    # VMEM limit derived from the actual double-buffered tile footprint.
    w_bytes = jnp.dtype(weight_t.dtype).itemsize
    tile_bytes = tm * tk * 1 + tk * tn * w_bytes + 2 * 4 * tn + tm * tn * 1
    vmem_needed = 2 * tile_bytes + tm * tn * 4 + (8 << 20)      # bufs + acc + headroom
    vmem_cap = (100 << 20) if _use_int8_mxu() else (48 << 20)   # v5e/v6e vs v7x
    vmem_limit = int(min(vmem_cap, max(32 << 20, vmem_needed)))

    cost = pl.CostEstimate(
        flops=2 * Bp * Np * Kp,
        transcendentals=0,
        bytes_accessed=Bp * Kp + Kp * Np * w_bytes + Bp * Np + 8 * Np,
    )

    out = pl.pallas_call(
        kernel,
        out_shape=jax.ShapeDtypeStruct((Bp, Np), jnp.int8),
        grid_spec=pltpu.PrefetchScalarGridSpec(
            num_scalar_prefetch=0,
            grid=grid,
            in_specs=[
                pl.BlockSpec((tm, tk), lambda i, j, k: (i, k)),   # x
                pl.BlockSpec((tk, tn), lambda i, j, k: (k, j)),   # weight_t
                pl.BlockSpec((1, tn), lambda i, j, k: (0, j)),    # shifted bias
                pl.BlockSpec((1, tn), lambda i, j, k: (0, j)),    # folded scale
            ],
            out_specs=pl.BlockSpec((tm, tn), lambda i, j, k: (i, j)),
            scratch_shapes=[pltpu.VMEM((tm, tn), jnp.int32)],
        ),
        compiler_params=pltpu.CompilerParams(
            dimension_semantics=("parallel", "parallel", "arbitrary"),
            vmem_limit_bytes=vmem_limit,
        ),
        cost_estimate=cost,
    )(x, weight_t, bias2d, scale2d)

    if (Bp, Np) != (B, N):
        out = out[:B, :N]
    return out


class QuantizedLinear:
    """JAX/Pallas mirror of the PyTorch QuantizedLinear module."""

    def __init__(self, weight, bias, input_zero_point, output_zero_point,
                 input_scale, weight_scale, output_scale,
                 feature_bit_width=8, weight_bit_width=8):
        self.weight = weight
        self.bias = bias
        self.input_zero_point = input_zero_point        # stored, unused in fwd
        self.output_zero_point = output_zero_point
        self.input_scale = input_scale
        self.weight_scale = weight_scale
        self.output_scale = output_scale
        self.feature_bit_width = feature_bit_width
        self.weight_bit_width = weight_bit_width

        # One-time costs paid at construction (not per forward call):
        #   * weight pre-transposed to [K, N] (MXU-friendly RHS layout);
        #     pre-cast to bf16 on chips without an int8 MXU path (v7x).
        #   * requant constants folded in f64, cast once to f32.
        wt = jnp.asarray(weight).T
        if not _use_int8_mxu():
            wt = wt.astype(jnp.bfloat16)
        self.weight_t = wt
        ws64 = np.asarray(weight_scale, dtype=np.float64)
        combined = np.float64(input_scale) * ws64 / np.float64(output_scale)
        self.combined_scale = jnp.asarray(combined.astype(np.float32))

    def __call__(self, x):
        return quantized_linear(
            x, self.weight_t, self.bias, self.combined_scale,
            output_zero_point=self.output_zero_point,
            feature_bit_width=self.feature_bit_width,
        )


def _reference_numpy(x, w, b, ws, s_x, s_y, z_y, bit_width):
    """High-precision (f64) reference of the module semantics."""
    acc = x.astype(np.int64) @ w.astype(np.int64).T + b.astype(np.int64)[None, :]
    y = (acc.astype(np.float64) * np.float64(s_x) * ws.astype(np.float64)[None, :]
         / np.float64(s_y) + np.float64(z_y))
    q_min, q_max = get_quantize_range(bit_width)
    return np.clip(np.rint(y), q_min, q_max).astype(np.int8)


if __name__ == "__main__":
    B, K, N = 8, 32, 128  # batch, in_features, out_features

    key = jax.random.PRNGKey(0)
    k_x, k_w, k_b, k_ws = jax.random.split(key, 4)

    x = jax.random.randint(k_x, (B, K), -128, 128, dtype=jnp.int32).astype(jnp.int8)
    weight = jax.random.randint(k_w, (N, K), -128, 128, dtype=jnp.int32).astype(jnp.int8)
    bias = jax.random.randint(k_b, (N,), -512, 512, dtype=jnp.int32)
    weight_scale = jax.random.uniform(k_ws, (N,), dtype=jnp.float32,
                                      minval=0.001, maxval=0.01)

    input_zero_point = 3        # stored but unused in forward (bias pre-shifted)
    output_zero_point = -5
    input_scale = 0.02
    output_scale = 0.15

    layer = QuantizedLinear(weight, bias, input_zero_point, output_zero_point,
                            input_scale, weight_scale, output_scale)

    out = jax.block_until_ready(layer(x))

    ref = _reference_numpy(np.asarray(x), np.asarray(weight), np.asarray(bias),
                           np.asarray(weight_scale), input_scale, output_scale,
                           output_zero_point, 8)
    # Folded f32 requant scale may differ from the f64 reference by at most one
    # rounding step on near-.5 boundaries; everything else matches exactly.
    diff = np.abs(np.asarray(out).astype(np.int32) - ref.astype(np.int32))
    assert int(diff.max()) <= 1, f"max |diff| = {int(diff.max())}"

    print("KERNEL_OK")
</pallas_src>

<mosaic_0001>
module attributes {stable_mosaic.version = 11 : i64} {
  func.func @_qlinear_kernel(%arg0: i32, %arg1: i32, %arg2: i32, %arg3: memref<32x128xi8, #tpu.memory_space<vmem>>, %arg4: memref<128x128xbf16, #tpu.memory_space<vmem>>, %arg5: memref<1x128xi32, #tpu.memory_space<vmem>>, %arg6: memref<1x128xf32, #tpu.memory_space<vmem>>, %arg7: memref<32x128xi8, #tpu.memory_space<vmem>>, %arg8: memref<32x128xi32, #tpu.memory_space<vmem>>) attributes {dimension_semantics = [#tpu.dimension_semantics<parallel>, #tpu.dimension_semantics<parallel>, #tpu.dimension_semantics<arbitrary>], iteration_bounds = array<i64: 1, 1, 1>, scalar_prefetch = 0 : i64, scratch_operands = 1 : i64, tpu.core_type = #tpu.core_type<tc>, window_params = [{transform_indices = @transform_0, window_bounds = array<i64: 32, 128>}, {transform_indices = @transform_1, window_bounds = array<i64: 128, 128>}, {transform_indices = @transform_2, window_bounds = array<i64: 1, 128>}, {transform_indices = @transform_3, window_bounds = array<i64: 1, 128>}, {transform_indices = @transform_4, window_bounds = array<i64: 32, 128>}]} {
    %c0_i32 = arith.constant 0 : i32
    %0 = arith.cmpi eq, %arg2, %c0_i32 : i32
    %1 = arith.extui %0 : i1 to i32
    %c0_i32_0 = arith.constant 0 : i32
    %2 = arith.cmpi ne, %1, %c0_i32_0 : i32
    scf.if %2 {
      %c0_i32_10 = arith.constant 0 : i32
      %14 = vector.broadcast %c0_i32_10 : i32 to vector<32x128xi32>
      %c0_11 = arith.constant 0 : index
      %c0_12 = arith.constant 0 : index
      %15 = vector.load %arg8[%c0_11, %c0_12] : memref<32x128xi32, #tpu.memory_space<vmem>>, vector<32x128xi32>
      tpu.vector_store %arg8[%c0_11, %c0_12], %14 {strides = array<i32>} : memref<32x128xi32, #tpu.memory_space<vmem>>, vector<32x128xi32>,
    } else {
    }
    %c0 = arith.constant 0 : index
    %c0_1 = arith.constant 0 : index
    %3 = vector.load %arg3[%c0, %c0_1] : memref<32x128xi8, #tpu.memory_space<vmem>>, vector<32x128xi8>
    %c0_2 = arith.constant 0 : index
    %c0_3 = arith.constant 0 : index
    %4 = vector.load %arg4[%c0_2, %c0_3] : memref<128x128xbf16, #tpu.memory_space<vmem>>, vector<128x128xbf16>
    %5 = arith.sitofp %3 : vector<32x128xi8> to vector<32x128xbf16>
    %cst = arith.constant dense<0.000000e+00> : vector<32x128xf32>
    %6 = tpu.matmul %5, %4, %cst {dimension_numbers = #tpu.dot_dimension_numbers<[1], [0], [0], [1], [0, 0, 1, 1], [], []>} : vector<32x128xbf16>, vector<128x128xbf16>, vector<32x128xf32> -> vector<32x128xf32>
    %c0_4 = arith.constant 0 : index
    %c0_5 = arith.constant 0 : index
    %7 = vector.load %arg8[%c0_4, %c0_5] : memref<32x128xi32, #tpu.memory_space<vmem>>, vector<32x128xi32>
    %8 = arith.fptosi %6 : vector<32x128xf32> to vector<32x128xi32>
    %9 = arith.addi %7, %8 : vector<32x128xi32>
    %c0_6 = arith.constant 0 : index
    %c0_7 = arith.constant 0 : index
    %10 = vector.load %arg8[%c0_6, %c0_7] : memref<32x128xi32, #tpu.memory_space<vmem>>, vector<32x128xi32>
    tpu.vector_store %arg8[%c0_6, %c0_7], %9 {strides = array<i32>} : memref<32x128xi32, #tpu.memory_space<vmem>>, vector<32x128xi32>,
    %c0_i32_8 = arith.constant 0 : i32
    %11 = arith.cmpi eq, %arg2, %c0_i32_8 : i32
    %12 = arith.extui %11 : i1 to i32
    %c0_i32_9 = arith.constant 0 : i32
    %13 = arith.cmpi ne, %12, %c0_i32_9 : i32
    scf.if %13 {
      %c0_10 = arith.constant 0 : index
      %c0_11 = arith.constant 0 : index
      %14 = vector.load %arg8[%c0_10, %c0_11] : memref<32x128xi32, #tpu.memory_space<vmem>>, vector<32x128xi32>
      %c0_12 = arith.constant 0 : index
      %c0_13 = arith.constant 0 : index
      %15 = vector.load %arg5[%c0_12, %c0_13] : memref<1x128xi32, #tpu.memory_space<vmem>>, vector<1x128xi32>
      %16 = vector.broadcast %15 : vector<1x128xi32> to vector<32x128xi32>
      %17 = arith.addi %14, %16 : vector<32x128xi32>
      %18 = arith.sitofp %17 : vector<32x128xi32> to vector<32x128xf32>
      %c0_14 = arith.constant 0 : index
      %c0_15 = arith.constant 0 : index
      %19 = vector.load %arg6[%c0_14, %c0_15] : memref<1x128xf32, #tpu.memory_space<vmem>>, vector<1x128xf32>
      %20 = vector.broadcast %19 : vector<1x128xf32> to vector<32x128xf32>
      %21 = arith.mulf %18, %20 : vector<32x128xf32>
      %cst_16 = arith.constant -5.000000e+00 : f32
      %22 = vector.broadcast %cst_16 : f32 to vector<32x128xf32>
      %23 = arith.addf %21, %22 : vector<32x128xf32>
      %24 = math.roundeven %23 : vector<32x128xf32>
      %c-128_i32 = arith.constant -128 : i32
      %c127_i32 = arith.constant 127 : i32
      %25 = arith.sitofp %c-128_i32 : i32 to f32
      %26 = vector.broadcast %25 : f32 to vector<32x128xf32>
      %27 = arith.maximumf %26, %24 : vector<32x128xf32>
      %28 = arith.sitofp %c127_i32 : i32 to f32
      %29 = vector.broadcast %28 : f32 to vector<32x128xf32>
      %30 = arith.minimumf %29, %27 : vector<32x128xf32>
      %31 = arith.fptosi %30 : vector<32x128xf32> to vector<32x128xi8>
      %c0_17 = arith.constant 0 : index
      %c0_18 = arith.constant 0 : index
      %32 = vector.load %arg7[%c0_17, %c0_18] : memref<32x128xi8, #tpu.memory_space<vmem>>, vector<32x128xi8>
      tpu.vector_store %arg7[%c0_17, %c0_18], %31 {strides = array<i32>} : memref<32x128xi8, #tpu.memory_space<vmem>>, vector<32x128xi8>,
    } else {
    }
    return
  }
  func.func @transform_0(%arg0: i32, %arg1: i32, %arg2: i32) -> (i32, i32) {
    %c0_i32 = arith.constant 0 : i32
    return %arg0, %arg2 : i32, i32
  }
  func.func @transform_1(%arg0: i32, %arg1: i32, %arg2: i32) -> (i32, i32) {
    %c0_i32 = arith.constant 0 : i32
    return %arg2, %arg1 : i32, i32
  }
  func.func @transform_2(%arg0: i32, %arg1: i32, %arg2: i32) -> (i32, i32) {
    %c0_i32 = arith.constant 0 : i32
    %c0_i32_0 = arith.constant 0 : i32
    return %c0_i32, %arg1 : i32, i32
  }
  func.func @transform_3(%arg0: i32, %arg1: i32, %arg2: i32) -> (i32, i32) {
    %c0_i32 = arith.constant 0 : i32
    %c0_i32_0 = arith.constant 0 : i32
    return %c0_i32, %arg1 : i32, i32
  }
  func.func @transform_4(%arg0: i32, %arg1: i32, %arg2: i32) -> (i32, i32) {
    %c0_i32 = arith.constant 0 : i32
    return %arg0, %arg1 : i32, i32
  }
}

</mosaic_0001>

<bundles_post_ra>
// kernel: tpu_custom_call.1
= control target key start
LH: loop header
LB: loop body
LE: loop exit
PB: predicated region body
PF: predicated region fallthrough
CT: control target
= control target key end

     0   :  { %9 = vsyncpa [#allocation4], 0  ;;  %s479_s0 = inlined_call_operand.hbm [shape: s8[32,128], index: 0, kind: input, shape index: {}]   ;;  %s480_s1 = inlined_call_operand.hbm [shape: bf16[128,128], index: 1, kind: input, shape index: {}]   ;;  %s481_s2 = inlined_call_operand.vmem [shape: s32[1,128], index: 2, kind: input, shape index: {}]   ;;  %s482_s3 = inlined_call_operand.vmem [shape: f32[1,128], index: 3, kind: input, shape index: {}]   ;;  %s483_s4 = inlined_call_operand.hbm [shape: s8[32,128], index: 4, kind: output, shape index: {}]  }
   0x1   :  { %10 = vsyncpa [#allocation7], 0 }
   0x2   :  { %11 = vsyncpa [#allocation5], 0  ;;  %s400_s15 = smov [#allocation3]   ;;  %s401_s17 = smov [#allocation6]  }
   0x3   :  { %s18_s16 = sshll.u32 %s400_s15, 4  ;;  %s27_s18 = sshll.u32 %s401_s17, 4  ;;  %s19_s16 = int_to_ptr.vmem [resolvable:$true] %s18_s16  ;;  %s430_s18 = int_to_ptr.vmem [resolvable:$true] %s27_s18 }
   0x4   :  { %s328_s21 = scalar_lea.hbm %s479_s0, 128 }
   0x5   :  { %p329_p0 = scmp.ne.s32.totalorder %s479_s0, %s328_s21  ;;  %p332_p1 = scmp.lt.u32.totalorder %s328_s21, %s479_s0 }
   0x7   :  { %p334_p2 = pnand %p332_p1, %p329_p0 }
   0x9   :  { %337 = shalt.err (!%p334_p2)
}
   0xa   :  { %s338_s26 = scalar_lea.vmem %s19_s16, 128  ;;  %p343_p4 = scmp.lt.s32.totalorder %s19_s16, %s19_s16 }
   0xb   :  { %p339_p3 = scmp.ne.s32.totalorder %s19_s16, %s338_s26  ;;  %p344_p5 = scmp.lt.s32.totalorder %s338_s26, %s338_s26 }
   0xd   :  { %p345_p6 = por %p344_p5, %p343_p4 }
   0xf   :  { %p346_p7 = pnand %p345_p6, %p339_p3 }
  0x11   :  { %349 = shalt.err (!%p346_p7)
}
  0x12   :  { %21 = dma.hbm_to_vmem [thread:$0]  %s479_s0, 128, %s19_s16, [#allocation4]  }
  0x13   :  { %s350_s5 = scalar_lea.hbm %s480_s1, 1024 }
  0x14   :  { %p351_p8 = scmp.ne.s32.totalorder %s480_s1, %s350_s5  ;;  %p354_p9 = scmp.lt.u32.totalorder %s350_s5, %s480_s1 }
  0x16   :  { %p356_p10 = pnand %p354_p9, %p351_p8 }
  0x18   :  { %359 = shalt.err (!%p356_p10)
}
  0x19   :  { %s360_s10 = scalar_lea.vmem %s430_s18, 1024  ;;  %p365_p12 = scmp.lt.s32.totalorder %s430_s18, %s430_s18 }
  0x1a   :  { %p361_p11 = scmp.ne.s32.totalorder %s430_s18, %s360_s10  ;;  %p366_p13 = scmp.lt.s32.totalorder %s360_s10, %s360_s10 }
  0x1c   :  { %p367_p0 = por %p366_p13, %p365_p12 }
  0x1e   :  { %p368_p1 = pnand %p367_p0, %p361_p11 }
  0x20   :  { %371 = shalt.err (!%p368_p1)
}
  0x21   :  { %s402_s0 = smov 64   ;;  %s403_s11 = smov 4  }
  0x22   :  { %33 = dma.hbm_to_vmem [thread:$0]  %s480_s1, 1024, %s430_s18, [#allocation7], %s402_s0, %s402_s0, %s403_s11  }
  0x23   :  { %394 = dma.done.wait [#allocation4], 128  }
  0x24   :  { %395 = vsyncadd [#allocation4], 4294967168 }
  0x25   :  { %396 = dma.done.wait [#allocation7], 1024  }
  0x26   :  { %397 = vsyncadd [#allocation7], 4294966272  ;;  %v320_v0 = vld [vmem:[#allocation6] sm:$0xff]   ;;  %v321_v1 = vld [vmem:[#allocation6 + $0x8] sm:$0xff]  }
  0x27   :  { %283 = vmatprep.subr.bf16.mxu0 %v320_v0  ;;  %v322_v2 = vld [vmem:[#allocation6 + $0x10] sm:$0xff]   ;;  %v323_v3 = vld [vmem:[#allocation6 + $0x18] sm:$0xff]   ;;  %v324_v6 = vld [vmem:[#allocation6 + $0x20] sm:$0xff]  }
  0x28   :  { %284 = vmatpush3.bf16.msra.mxu0 %v320_v0  ;;  %v53_v4 = vld [vmem:[#allocation3] sm:$0xff]  ;;  %v325_v7 = vld [vmem:[#allocation6 + $0x28] sm:$0xff]   ;;  %v326_v8 = vld [vmem:[#allocation6 + $0x30] sm:$0xff]  }
  0x29   :  { %285 = vmatprep.subr.bf16.mxu0 %v321_v1  ;;  %v70_v5 = vunpack.c.l.s8.bf16 %v53_v4  ;;  %v327_v9 = vld [vmem:[#allocation6 + $0x38] sm:$0xff]   ;;  %v71_v10 = vunpack.c.h.s8.bf16 %v53_v4 }
  0x2a   :  { %v271_v14 = vld [vmem:[%s481_s2] ss:$0 sm:$0xff]  ;;  %s404_s2 = smov [#allocation8]  }
  0x2b   :  { %299 = vmatprep.mubr.bf16.mxu0 %v70_v5  ;;  %v272_v24 = vld [vmem:[%s482_s3] ss:$0 sm:$0xff]  ;;  %s253_s3 = sshll.u32 %s404_s2, 4  ;;  %s254_s3 = int_to_ptr.vmem [resolvable:$true] %s253_s3 }
  0x2c   :  { %286 = vmatpush3.bf16.msra.mxu0 %v321_v1  ;;  %s372_s17 = scalar_lea.vmem %s254_s3, 128  ;;  %p377_p3 = scmp.lt.s32.totalorder %s254_s3, %s254_s3 }
  0x2d   :  { %287 = vmatprep.subr.bf16.mxu0 %v322_v2  ;;  %p373_p2 = scmp.ne.s32.totalorder %s254_s3, %s372_s17  ;;  %p378_p4 = scmp.lt.s32.totalorder %s372_s17, %s372_s17 }
  0x2f   :  { %p379_p5 = por %p378_p4, %p377_p3 }
  0x30   :  { %288 = vmatpush3.bf16.msra.mxu0 %v322_v2 }
  0x31   :  { %289 = vmatprep.subr.bf16.mxu0 %v323_v3  ;;  %p380_p6 = pnand %p379_p5, %p373_p2 }
  0x34   :  { %290 = vmatpush3.bf16.msra.mxu0 %v323_v3 }
  0x35   :  { %291 = vmatprep.subr.bf16.mxu0 %v324_v6 }
  0x38   :  { %292 = vmatpush3.bf16.msra.mxu0 %v324_v6 }
  0x39   :  { %293 = vmatprep.subr.bf16.mxu0 %v325_v7 }
  0x3c   :  { %294 = vmatpush3.bf16.msra.mxu0 %v325_v7 }
  0x3d   :  { %295 = vmatprep.subr.bf16.mxu0 %v326_v8 }
  0x40   :  { %296 = vmatpush3.bf16.msra.mxu0 %v326_v8 }
  0x41   :  { %297 = vmatprep.subr.bf16.mxu0 %v327_v9 }
  0x44   :  { %298 = vmatpush3.bf16.msra.mxu0 %v327_v9 }
  0x47   :  { %300 = vmatmul.mubr.bf16.vlgmr.msra.gmra.mrb[0].mxu0 %v71_v10 }
 0x11a   :  { %v301_v11 = vpop.f32.mrb[0].mxu0 }
 0x11b   :  { %v307_v12 = vtrunc.f32 %v301_v11  ;;  %v154_v13 = vpop.f32.mrb[1].mxu0 }
 0x11c   :  { %v303_v15 = vtrunc.f32 %v154_v13  ;;  %v302_v16 = vpop.f32.mrb[2].mxu0 }
 0x11d   :  { %v308_v17 = vcvt.f32.s32 %v307_v12  ;;  %v309_v18 = vtrunc.f32 %v302_v16  ;;  %v157_v19 = vpop.f32.mrb[3].mxu0 }
 0x11e   :  { %v304_v20 = vcvt.f32.s32 %v303_v15  ;;  %v305_v21 = vtrunc.f32 %v157_v19 }
 0x11f   :  { %v199_v22 = vadd.s32 %v308_v17, %v271_v14  ;;  %v310_v23 = vcvt.f32.s32 %v309_v18 }
 0x120   :  { %v197_v25 = vadd.s32 %v304_v20, %v271_v14  ;;  %v306_v26 = vcvt.f32.s32 %v305_v21 }
 0x121   :  { %v203_v27 = vcvt.s32.f32 %v199_v22  ;;  %v200_v28 = vadd.s32 %v310_v23, %v271_v14 }
 0x122   :  { %v201_v29 = vcvt.s32.f32 %v197_v25  ;;  %v198_v30 = vadd.s32 %v306_v26, %v271_v14 }
 0x123   :  { %v214_v31 = vmul.f32 %v272_v24, %v203_v27  ;;  %v204_v32 = vcvt.s32.f32 %v200_v28 }
 0x124   :  { %v212_v33 = vmul.f32 %v272_v24, %v201_v29  ;;  %v202_v34 = vcvt.s32.f32 %v198_v30 }
 0x125   :  { %v218_v35 = vadd.f32 -5.0, %v214_v31  ;;  %v215_v36 = vmul.f32 %v272_v24, %v204_v32 }
 0x126   :  { %v216_v37 = vadd.f32 -5.0, %v212_v33  ;;  %v213_v38 = vmul.f32 %v272_v24, %v202_v34 }
 0x127   :  { %v313_v39 = vround.rtne.f32 %v218_v35  ;;  %v219_v40 = vadd.f32 -5.0, %v215_v36 }
 0x128   :  { %v311_v41 = vround.rtne.f32 %v216_v37  ;;  %v217_v42 = vadd.f32 -5.0, %v213_v38 }
 0x129   :  { %v226_v43 = vmax.f32 %v313_v39, -128.0  ;;  %v314_v44 = vround.rtne.f32 %v219_v40 }
 0x12a   :  { %v224_v45 = vmax.f32 %v311_v41, -128.0  ;;  %v312_v46 = vround.rtne.f32 %v217_v42 }
 0x12b   :  { %v230_v47 = vmin.f32 %v226_v43, 127.0  ;;  %v227_v48 = vmax.f32 %v314_v44, -128.0 }
 0x12c   :  { %v228_v49 = vmin.f32 %v224_v45, 127.0  ;;  %v225_v50 = vmax.f32 %v312_v46, -128.0 }
 0x12d   :  { %v231_v51 = vmin.f32 %v227_v48, 127.0  ;;  %v234_v53 = vtrunc.f32 %v230_v47 }
 0x12e   :  { %v229_v52 = vmin.f32 %v225_v50, 127.0  ;;  %v232_v56 = vtrunc.f32 %v228_v49 }
 0x12f   :  { %v235_v54 = vtrunc.f32 %v231_v51 }
 0x130   :  { %v233_v55 = vtrunc.f32 %v229_v52 }
 0x131   :  { %v240_v57 = vpack.c.f32.eXmY %v234_v53, %v235_v54, 312 }
 0x132   :  { %v236_v58 = vpack.c.f32.eXmY %v232_v56, %v233_v55, 312 }
 0x134   :  { %v244_v59 = vpack.c.b8 %v240_v57, %v236_v58 }
 0x136   :  { %246 = vst [vmem:[#allocation8] sm:$0xff] %v244_v59 }
 0x137   :  { %383 = shalt.err (!%p380_p6)
}
 0x138   :  { %s384_s20 = scalar_lea.hbm %s483_s4, 128 }
 0x139   :  { %p385_p7 = scmp.ne.s32.totalorder %s483_s4, %s384_s20  ;;  %p388_p8 = scmp.lt.u32.totalorder %s384_s20, %s483_s4 }
 0x13b   :  { %p390_p9 = pnand %p388_p8, %p385_p7 }
 0x13d   :  { %393 = shalt.err (!%p390_p9)
}
 0x13e   :  { %256 = dma.vmem_to_hbm [thread:$0]  %s254_s3, 128, %s483_s4, [#allocation5]  }
 0x13f   :  { %398 = dma.done.wait [#allocation5], 128  }
 0x140   :  { %399 = vsyncadd [#allocation5], 4294967168 }
 0x141   :  { %260 = vsyncpa [#allocation4], 1 }
 0x142   :  { %261 = vsyncpa [#allocation7], 1 }
 0x143   :  { %262 = vsyncpa [#allocation5], 1 }

</bundles_post_ra>
